<compile_context>
chip_gen: v5e
topology: v5e:2x2
jax: 0.10.0
libtpu: 0.0.40
codegen_flags: <defaults>
</compile_context>

<pallas_src>
import numpy as np

import jax
import jax.numpy as jnp
from jax.experimental import pallas as pl
from jax.experimental.pallas import tpu as pltpu


def _make_kernel(T, V, Mi):
    """Kernel body for one block of Nb samples (M = Nb*C rows, T*V lanes)."""

    def kernel(x_ref, w1_ref, wt_ref, wv_ref, pool_ref, ext_ref, exv_ref,
               col_ref, o_ref):
        x = x_ref[...]                                     # (M, T*V) lane-dense

        col = col_ref[...]                                 # (M, 5) packed vectors
        bt, bv = col[:, 0:1], col[:, 1:2]
        bn2s, bn2b = col[:, 2:3], col[:, 3:4]
        b1 = col[:Mi, 4:5]                                 # (Mi, 1)

        # Mean over joints / frames for every (sample, channel) row: one MXU
        # pass over the big operand yields the concatenated [T | V] columns.
        pooled = jnp.dot(x, pool_ref[...],
                         preferred_element_type=jnp.float32)        # (M, T+V)

        # fcn: block-diagonal 1x1 conv (BN1 folded) + Hardswish, all Nb
        # samples and both column groups in a single matmul.
        y = jnp.dot(w1_ref[...], pooled,
                    preferred_element_type=jnp.float32) + b1        # (Mi, T+V)
        y = y * jnp.clip(y + 3.0, 0.0, 6.0) * (1.0 / 6.0)           # Hardswish

        # conv_t / conv_v (block-diagonal) + sigmoid.  Only the tiny
        # (Mi, T+V) activation y is split; the constant weights arrive
        # pre-split so no matmul operand needs in-kernel slicing.
        t_att = jax.nn.sigmoid(
            jnp.dot(wt_ref[...], y[:, :T],
                    preferred_element_type=jnp.float32) + bt)       # (M, T)
        v_att = jax.nn.sigmoid(
            jnp.dot(wv_ref[...], y[:, T:],
                    preferred_element_type=jnp.float32) + bv)       # (M, V)

        # Fold the BN2 per-channel scale into the joint attention while it is
        # still tiny (M, V) — saves a full-width (M, T*V) multiply later.
        v_att = v_att * bn2s

        # Outer-product attention map expanded straight into the lane-dense
        # (M, T*V) slab via constant indicator matmuls (no in-kernel reshape).
        att = (jnp.dot(t_att, ext_ref[...], preferred_element_type=jnp.float32)
               * jnp.dot(v_att, exv_ref[...], preferred_element_type=jnp.float32))

        # Gate + folded BN2 shift + residual + Swish — full-width elementwise
        # epilogue (one mul, two adds, one sigmoid, one mul per element).
        s = x * att + bn2b + x
        o_ref[...] = (s * jax.nn.sigmoid(s)).astype(o_ref.dtype)

    return kernel


def _choose_nb(N, C, TV, itemsize, vmem_budget_bytes=8 * 1024 * 1024):
    """Largest samples-per-step whose double-buffered in+out block fits the
    VMEM budget and satisfies the (8, 128) row constraint; prefers >=2 grid
    steps so the batch axis can shard across TensorCores."""
    cands = []
    for nb in range(1, N + 1):
        if N % nb:
            continue
        rows = nb * C
        if rows % 8 != 0 and nb != N:
            continue
        if 4 * rows * TV * itemsize > vmem_budget_bytes and nb != 1:
            continue
        cands.append(nb)
    if not cands:
        return N
    multi = [nb for nb in cands if N // nb >= 2]
    return max(multi) if multi else max(cands)


def st_joint_att_pallas(x, raw_params, nb=None):
    """x: (N, C, T, V). raw_params: PyTorch module parameters (BN eval mode)."""
    (w1, b1, g1, be1, m1, v1, wt, bt, wv, bv, g2, be2, m2, v2) = raw_params
    eps = 1e-5
    N, C, T, V = x.shape
    Cin = w1.shape[0]
    TV = T * V

    if nb is None:
        nb = _choose_nb(N, C, TV, jnp.dtype(x.dtype).itemsize)
    assert N % nb == 0
    M, Mi = nb * C, nb * Cin

    # ---- parameter glue (cheap, outside the kernel) ------------------------
    # fold BN1 (eval) into the fcn conv weight/bias
    s1 = g1 / jnp.sqrt(v1 + eps)
    w1f = w1 * s1[:, None]                                   # (Cin, C)
    b1f = (s1 * (b1 - m1) + be1)[:, None]                    # (Cin, 1)
    # fold BN2 (eval) into per-channel scale/shift
    s2 = g2 / jnp.sqrt(v2 + eps)
    bn2s = s2[:, None]                                       # (C, 1)
    bn2b = (be2 - m2 * s2)[:, None]                          # (C, 1)

    # block-diagonal weights: one MXU matmul per weight covers all nb samples
    eye = jnp.eye(nb, dtype=x.dtype)
    w1_blk = jnp.kron(eye, w1f.astype(x.dtype))              # (Mi, M)
    wt_blk = jnp.kron(eye, wt.astype(x.dtype))               # (M, Mi)
    wv_blk = jnp.kron(eye, wv.astype(x.dtype))               # (M, Mi)

    # packed per-row vectors: [bt | bv | bn2_scale | bn2_shift | b1(padded)]
    b1_col = jnp.zeros((M, 1), x.dtype).at[:Mi].set(
        jnp.tile(b1f, (nb, 1)).astype(x.dtype))
    col_pack = jnp.concatenate(
        [jnp.tile(bt[:, None], (nb, 1)),
         jnp.tile(bv[:, None], (nb, 1)),
         jnp.tile(bn2s, (nb, 1)),
         jnp.tile(bn2b, (nb, 1)),
         b1_col], axis=1).astype(x.dtype)                    # (M, 5)

    # constant pooling / expansion indicator matrices (static)
    t_idx = np.arange(TV) // V
    v_idx = np.arange(TV) % V
    pool_np = np.zeros((TV, T + V), np.float32)
    pool_np[np.arange(TV), t_idx] = 1.0 / V                  # mean over joints
    pool_np[np.arange(TV), T + v_idx] = 1.0 / T              # mean over frames
    ext_np = np.zeros((T, TV), np.float32)
    ext_np[t_idx, np.arange(TV)] = 1.0                       # repeat t_att over V
    exv_np = np.zeros((V, TV), np.float32)
    exv_np[v_idx, np.arange(TV)] = 1.0                       # tile v_att over T
    pool = jnp.asarray(pool_np, dtype=x.dtype)
    exT = jnp.asarray(ext_np, dtype=x.dtype)
    exV = jnp.asarray(exv_np, dtype=x.dtype)

    # lane-dense slab: (N*C, T*V), T*V mapped to lanes (full-width stores)
    x2 = x.reshape(N * C, TV)

    kernel = _make_kernel(T, V, Mi)

    def _const(shape):
        return pl.BlockSpec(shape, lambda i: (0, 0))         # resident params

    grid_spec = pltpu.PrefetchScalarGridSpec(
        num_scalar_prefetch=0,
        grid=(N // nb,),
        in_specs=[
            pl.BlockSpec((M, TV), lambda i: (i, 0)),         # nb-sample x block
            _const((Mi, M)),                                 # block-diag fcn weight
            _const((M, Mi)),                                 # conv_t weight
            _const((M, Mi)),                                 # conv_v weight
            _const((TV, T + V)),                             # pooling matrix
            _const((T, TV)),                                 # t-expansion matrix
            _const((V, TV)),                                 # v-expansion matrix
            _const((M, 5)),                                  # packed bias/scale cols
        ],
        out_specs=pl.BlockSpec((M, TV), lambda i: (i, 0)),
    )

    out2 = pl.pallas_call(
        kernel,
        out_shape=jax.ShapeDtypeStruct((N * C, TV), x.dtype),
        grid_spec=grid_spec,
        compiler_params=pltpu.CompilerParams(
            dimension_semantics=("parallel",),
            vmem_limit_bytes=32 * 1024 * 1024,
        ),
    )(x2, w1_blk, wt_blk, wv_blk, pool, exT, exV, col_pack)

    return out2.reshape(N, C, T, V)


def st_joint_att_ref(x, raw):
    """Pure-JAX reference mirroring the PyTorch forward (BN in eval mode)."""
    (w1, b1, g1, be1, m1, v1, wt, bt, wv, bv, g2, be2, m2, v2) = raw
    eps = 1e-5
    N, C, T, V = x.shape
    x_t = jnp.mean(x, axis=3, keepdims=True)                       # (N,C,T,1)
    x_v = jnp.transpose(jnp.mean(x, axis=2, keepdims=True),
                        (0, 1, 3, 2))                              # (N,C,V,1)
    cat = jnp.concatenate([x_t, x_v], axis=2)[..., 0]              # (N,C,T+V)
    y = jnp.einsum('oc,ncs->nos', w1, cat) + b1[None, :, None]
    y = (y - m1[None, :, None]) / jnp.sqrt(v1[None, :, None] + eps) \
        * g1[None, :, None] + be1[None, :, None]
    y = y * jnp.clip(y + 3.0, 0.0, 6.0) / 6.0
    y_t, y_v = y[:, :, :T], y[:, :, T:]
    t_att = jax.nn.sigmoid(jnp.einsum('oc,nct->not', wt, y_t) + bt[None, :, None])
    v_att = jax.nn.sigmoid(jnp.einsum('oc,ncv->nov', wv, y_v) + bv[None, :, None])
    att = t_att[:, :, :, None] * v_att[:, :, None, :]              # (N,C,T,V)
    z = x * att
    z = (z - m2[None, :, None, None]) / jnp.sqrt(v2[None, :, None, None] + eps) \
        * g2[None, :, None, None] + be2[None, :, None, None]
    s = z + x
    return s * jax.nn.sigmoid(s)


if __name__ == "__main__":
    # Module config: channel=8, reduct_ratio=2, bias=True
    N, C, T, V = 8, 8, 16, 16
    Cin = C // 2

    key = jax.random.PRNGKey(0)
    ks = jax.random.split(key, 16)

    x = jax.random.normal(ks[0], (N, C, T, V), dtype=jnp.float32)

    # deterministic synthetic parameters (shapes from the module's __init__)
    w1 = 0.2 * jax.random.normal(ks[1], (Cin, C), dtype=jnp.float32)     # fcn conv
    b1 = 0.1 * jax.random.normal(ks[2], (Cin,), dtype=jnp.float32)
    g1 = 1.0 + 0.1 * jax.random.normal(ks[3], (Cin,), dtype=jnp.float32)  # bn1
    be1 = 0.1 * jax.random.normal(ks[4], (Cin,), dtype=jnp.float32)
    m1 = 0.1 * jax.random.normal(ks[5], (Cin,), dtype=jnp.float32)
    v1 = jax.random.uniform(ks[6], (Cin,), minval=0.5, maxval=1.5,
                            dtype=jnp.float32)
    wt = 0.2 * jax.random.normal(ks[7], (C, Cin), dtype=jnp.float32)     # conv_t
    bt = 0.1 * jax.random.normal(ks[8], (C,), dtype=jnp.float32)
    wv = 0.2 * jax.random.normal(ks[9], (C, Cin), dtype=jnp.float32)     # conv_v
    bv = 0.1 * jax.random.normal(ks[10], (C,), dtype=jnp.float32)
    g2 = 1.0 + 0.1 * jax.random.normal(ks[11], (C,), dtype=jnp.float32)  # bn
    be2 = 0.1 * jax.random.normal(ks[12], (C,), dtype=jnp.float32)
    m2 = 0.1 * jax.random.normal(ks[13], (C,), dtype=jnp.float32)
    v2 = jax.random.uniform(ks[14], (C,), minval=0.5, maxval=1.5,
                            dtype=jnp.float32)

    raw = (w1, b1, g1, be1, m1, v1, wt, bt, wv, bv, g2, be2, m2, v2)

    out = st_joint_att_pallas(x, raw)
    out = jax.block_until_ready(out)

    ref = st_joint_att_ref(x, raw)
    np.testing.assert_allclose(np.asarray(out), np.asarray(ref),
                               rtol=1e-4, atol=2e-5)

    print("KERNEL_OK")
</pallas_src>

<mosaic_0001>
module attributes {stable_mosaic.version = 11 : i64} {
  func.func @kernel(%arg0: i32, %arg1: memref<32x256xf32, #tpu.memory_space<vmem>>, %arg2: memref<16x32xf32, #tpu.memory_space<vmem>>, %arg3: memref<32x16xf32, #tpu.memory_space<vmem>>, %arg4: memref<32x16xf32, #tpu.memory_space<vmem>>, %arg5: memref<256x32xf32, #tpu.memory_space<vmem>>, %arg6: memref<16x256xf32, #tpu.memory_space<vmem>>, %arg7: memref<16x256xf32, #tpu.memory_space<vmem>>, %arg8: memref<32x5xf32, #tpu.memory_space<vmem>>, %arg9: memref<32x256xf32, #tpu.memory_space<vmem>>) attributes {dimension_semantics = [#tpu.dimension_semantics<parallel>], iteration_bounds = array<i64: 2>, scalar_prefetch = 0 : i64, scratch_operands = 0 : i64, tpu.core_type = #tpu.core_type<tc>, window_params = [{transform_indices = @transform_0, window_bounds = array<i64: 32, 256>}, {pipeline_mode = #tpu.pipeline_mode<synchronous>, transform_indices = @transform_1, window_bounds = array<i64: 16, 32>}, {pipeline_mode = #tpu.pipeline_mode<synchronous>, transform_indices = @transform_2, window_bounds = array<i64: 32, 16>}, {pipeline_mode = #tpu.pipeline_mode<synchronous>, transform_indices = @transform_3, window_bounds = array<i64: 32, 16>}, {pipeline_mode = #tpu.pipeline_mode<synchronous>, transform_indices = @transform_4, window_bounds = array<i64: 256, 32>}, {pipeline_mode = #tpu.pipeline_mode<synchronous>, transform_indices = @transform_5, window_bounds = array<i64: 16, 256>}, {pipeline_mode = #tpu.pipeline_mode<synchronous>, transform_indices = @transform_6, window_bounds = array<i64: 16, 256>}, {pipeline_mode = #tpu.pipeline_mode<synchronous>, transform_indices = @transform_7, window_bounds = array<i64: 32, 5>}, {transform_indices = @transform_8, window_bounds = array<i64: 32, 256>}]} {
    %c0 = arith.constant 0 : index
    %c0_0 = arith.constant 0 : index
    %0 = vector.load %arg1[%c0, %c0_0] : memref<32x256xf32, #tpu.memory_space<vmem>>, vector<32x256xf32>
    %c0_1 = arith.constant 0 : index
    %c0_2 = arith.constant 0 : index
    %1 = vector.load %arg8[%c0_1, %c0_2] : memref<32x5xf32, #tpu.memory_space<vmem>>, vector<32x5xf32>
    %2 = vector.extract_strided_slice %1 {offsets = [0, 0], sizes = [32, 1], strides = [1, 1]} : vector<32x5xf32> to vector<32x1xf32>
    %3 = vector.extract_strided_slice %1 {offsets = [0, 1], sizes = [32, 1], strides = [1, 1]} : vector<32x5xf32> to vector<32x1xf32>
    %4 = vector.extract_strided_slice %1 {offsets = [0, 2], sizes = [32, 1], strides = [1, 1]} : vector<32x5xf32> to vector<32x1xf32>
    %5 = vector.extract_strided_slice %1 {offsets = [0, 3], sizes = [32, 1], strides = [1, 1]} : vector<32x5xf32> to vector<32x1xf32>
    %6 = vector.extract_strided_slice %1 {offsets = [0, 4], sizes = [16, 1], strides = [1, 1]} : vector<32x5xf32> to vector<16x1xf32>
    %c0_3 = arith.constant 0 : index
    %c0_4 = arith.constant 0 : index
    %7 = vector.load %arg5[%c0_3, %c0_4] : memref<256x32xf32, #tpu.memory_space<vmem>>, vector<256x32xf32>
    %cst = arith.constant dense<0.000000e+00> : vector<32x32xf32>
    %8 = tpu.matmul %0, %7, %cst {dimension_numbers = #tpu.dot_dimension_numbers<[1], [0], [0], [1], [0, 0, 1, 1], [], []>} : vector<32x256xf32>, vector<256x32xf32>, vector<32x32xf32> -> vector<32x32xf32>
    %c0_5 = arith.constant 0 : index
    %c0_6 = arith.constant 0 : index
    %9 = vector.load %arg2[%c0_5, %c0_6] : memref<16x32xf32, #tpu.memory_space<vmem>>, vector<16x32xf32>
    %cst_7 = arith.constant dense<0.000000e+00> : vector<16x32xf32>
    %10 = tpu.matmul %9, %8, %cst_7 {dimension_numbers = #tpu.dot_dimension_numbers<[1], [0], [0], [1], [0, 0, 1, 1], [], []>} : vector<16x32xf32>, vector<32x32xf32>, vector<16x32xf32> -> vector<16x32xf32>
    %11 = vector.broadcast %6 : vector<16x1xf32> to vector<16x32xf32>
    %12 = arith.addf %10, %11 : vector<16x32xf32>
    %cst_8 = arith.constant 3.000000e+00 : f32
    %13 = vector.broadcast %cst_8 : f32 to vector<16x32xf32>
    %14 = arith.addf %12, %13 : vector<16x32xf32>
    %cst_9 = arith.constant 0.000000e+00 : f32
    %cst_10 = arith.constant 6.000000e+00 : f32
    %15 = vector.broadcast %cst_9 : f32 to vector<16x32xf32>
    %16 = arith.maximumf %15, %14 : vector<16x32xf32>
    %17 = vector.broadcast %cst_10 : f32 to vector<16x32xf32>
    %18 = arith.minimumf %17, %16 : vector<16x32xf32>
    %19 = arith.mulf %12, %18 : vector<16x32xf32>
    %cst_11 = arith.constant 0.166666672 : f32
    %20 = vector.broadcast %cst_11 : f32 to vector<16x32xf32>
    %21 = arith.mulf %19, %20 : vector<16x32xf32>
    %c0_12 = arith.constant 0 : index
    %c0_13 = arith.constant 0 : index
    %22 = vector.load %arg3[%c0_12, %c0_13] : memref<32x16xf32, #tpu.memory_space<vmem>>, vector<32x16xf32>
    %23 = vector.extract_strided_slice %21 {offsets = [0, 0], sizes = [16, 16], strides = [1, 1]} : vector<16x32xf32> to vector<16x16xf32>
    %cst_14 = arith.constant dense<0.000000e+00> : vector<32x16xf32>
    %24 = tpu.matmul %22, %23, %cst_14 {dimension_numbers = #tpu.dot_dimension_numbers<[1], [0], [0], [1], [0, 0, 1, 1], [], []>} : vector<32x16xf32>, vector<16x16xf32>, vector<32x16xf32> -> vector<32x16xf32>
    %25 = vector.broadcast %2 : vector<32x1xf32> to vector<32x16xf32>
    %26 = arith.addf %24, %25 : vector<32x16xf32>
    %27 = arith.negf %26 : vector<32x16xf32>
    %28 = math.exp %27 : vector<32x16xf32>
    %cst_15 = arith.constant 1.000000e+00 : f32
    %29 = vector.broadcast %cst_15 : f32 to vector<32x16xf32>
    %30 = arith.addf %29, %28 : vector<32x16xf32>
    %31 = arith.divf %29, %30 : vector<32x16xf32>
    %c0_16 = arith.constant 0 : index
    %c0_17 = arith.constant 0 : index
    %32 = vector.load %arg4[%c0_16, %c0_17] : memref<32x16xf32, #tpu.memory_space<vmem>>, vector<32x16xf32>
    %33 = vector.extract_strided_slice %21 {offsets = [0, 16], sizes = [16, 16], strides = [1, 1]} : vector<16x32xf32> to vector<16x16xf32>
    %cst_18 = arith.constant dense<0.000000e+00> : vector<32x16xf32>
    %34 = tpu.matmul %32, %33, %cst_18 {dimension_numbers = #tpu.dot_dimension_numbers<[1], [0], [0], [1], [0, 0, 1, 1], [], []>} : vector<32x16xf32>, vector<16x16xf32>, vector<32x16xf32> -> vector<32x16xf32>
    %35 = vector.broadcast %3 : vector<32x1xf32> to vector<32x16xf32>
    %36 = arith.addf %34, %35 : vector<32x16xf32>
    %37 = arith.negf %36 : vector<32x16xf32>
    %38 = math.exp %37 : vector<32x16xf32>
    %cst_19 = arith.constant 1.000000e+00 : f32
    %39 = vector.broadcast %cst_19 : f32 to vector<32x16xf32>
    %40 = arith.addf %39, %38 : vector<32x16xf32>
    %41 = arith.divf %39, %40 : vector<32x16xf32>
    %42 = vector.broadcast %4 : vector<32x1xf32> to vector<32x16xf32>
    %43 = arith.mulf %41, %42 : vector<32x16xf32>
    %c0_20 = arith.constant 0 : index
    %c0_21 = arith.constant 0 : index
    %44 = vector.load %arg6[%c0_20, %c0_21] : memref<16x256xf32, #tpu.memory_space<vmem>>, vector<16x256xf32>
    %cst_22 = arith.constant dense<0.000000e+00> : vector<32x256xf32>
    %45 = tpu.matmul %31, %44, %cst_22 {dimension_numbers = #tpu.dot_dimension_numbers<[1], [0], [0], [1], [0, 0, 1, 1], [], []>} : vector<32x16xf32>, vector<16x256xf32>, vector<32x256xf32> -> vector<32x256xf32>
    %c0_23 = arith.constant 0 : index
    %c0_24 = arith.constant 0 : index
    %46 = vector.load %arg7[%c0_23, %c0_24] : memref<16x256xf32, #tpu.memory_space<vmem>>, vector<16x256xf32>
    %cst_25 = arith.constant dense<0.000000e+00> : vector<32x256xf32>
    %47 = tpu.matmul %43, %46, %cst_25 {dimension_numbers = #tpu.dot_dimension_numbers<[1], [0], [0], [1], [0, 0, 1, 1], [], []>} : vector<32x16xf32>, vector<16x256xf32>, vector<32x256xf32> -> vector<32x256xf32>
    %48 = arith.mulf %45, %47 : vector<32x256xf32>
    %49 = arith.mulf %0, %48 : vector<32x256xf32>
    %50 = vector.broadcast %5 : vector<32x1xf32> to vector<32x256xf32>
    %51 = arith.addf %49, %50 : vector<32x256xf32>
    %52 = arith.addf %51, %0 : vector<32x256xf32>
    %53 = arith.negf %52 : vector<32x256xf32>
    %54 = math.exp %53 : vector<32x256xf32>
    %cst_26 = arith.constant 1.000000e+00 : f32
    %55 = vector.broadcast %cst_26 : f32 to vector<32x256xf32>
    %56 = arith.addf %55, %54 : vector<32x256xf32>
    %57 = arith.divf %55, %56 : vector<32x256xf32>
    %58 = arith.mulf %52, %57 : vector<32x256xf32>
    %c0_27 = arith.constant 0 : index
    %c0_28 = arith.constant 0 : index
    %59 = vector.load %arg9[%c0_27, %c0_28] : memref<32x256xf32, #tpu.memory_space<vmem>>, vector<32x256xf32>
    tpu.vector_store %arg9[%c0_27, %c0_28], %58 {strides = array<i32>} : memref<32x256xf32, #tpu.memory_space<vmem>>, vector<32x256xf32>,
    return
  }
  func.func @transform_0(%arg0: i32) -> (i32, i32) {
    %c0_i32 = arith.constant 0 : i32
    %c0_i32_0 = arith.constant 0 : i32
    return %arg0, %c0_i32 : i32, i32
  }
  func.func @transform_1(%arg0: i32) -> (i32, i32) {
    %c0_i32 = arith.constant 0 : i32
    %c0_i32_0 = arith.constant 0 : i32
    %c0_i32_1 = arith.constant 0 : i32
    return %c0_i32, %c0_i32_0 : i32, i32
  }
  func.func @transform_2(%arg0: i32) -> (i32, i32) {
    %c0_i32 = arith.constant 0 : i32
    %c0_i32_0 = arith.constant 0 : i32
    %c0_i32_1 = arith.constant 0 : i32
    return %c0_i32, %c0_i32_0 : i32, i32
  }
  func.func @transform_3(%arg0: i32) -> (i32, i32) {
    %c0_i32 = arith.constant 0 : i32
    %c0_i32_0 = arith.constant 0 : i32
    %c0_i32_1 = arith.constant 0 : i32
    return %c0_i32, %c0_i32_0 : i32, i32
  }
  func.func @transform_4(%arg0: i32) -> (i32, i32) {
    %c0_i32 = arith.constant 0 : i32
    %c0_i32_0 = arith.constant 0 : i32
    %c0_i32_1 = arith.constant 0 : i32
    return %c0_i32, %c0_i32_0 : i32, i32
  }
  func.func @transform_5(%arg0: i32) -> (i32, i32) {
    %c0_i32 = arith.constant 0 : i32
    %c0_i32_0 = arith.constant 0 : i32
    %c0_i32_1 = arith.constant 0 : i32
    return %c0_i32, %c0_i32_0 : i32, i32
  }
  func.func @transform_6(%arg0: i32) -> (i32, i32) {
    %c0_i32 = arith.constant 0 : i32
    %c0_i32_0 = arith.constant 0 : i32
    %c0_i32_1 = arith.constant 0 : i32
    return %c0_i32, %c0_i32_0 : i32, i32
  }
  func.func @transform_7(%arg0: i32) -> (i32, i32) {
    %c0_i32 = arith.constant 0 : i32
    %c0_i32_0 = arith.constant 0 : i32
    %c0_i32_1 = arith.constant 0 : i32
    return %c0_i32, %c0_i32_0 : i32, i32
  }
  func.func @transform_8(%arg0: i32) -> (i32, i32) {
    %c0_i32 = arith.constant 0 : i32
    %c0_i32_0 = arith.constant 0 : i32
    return %arg0, %c0_i32 : i32, i32
  }
}

</mosaic_0001>

<bundles_post_ra>
// kernel: tpu_custom_call.1
= control target key start
LH: loop header
LB: loop body
LE: loop exit
PB: predicated region body
PF: predicated region fallthrough
CT: control target
= control target key end

     0   :  { %13 = vsyncpa [#allocation3], 0  ;;  %s1934_s0 = inlined_call_operand.vmem [shape: f32[64,256], index: 0, kind: input, shape index: {}]   ;;  %s1935_s1 = inlined_call_operand.vmem [shape: f32[16,32], index: 1, kind: input, shape index: {}]   ;;  %s1936_s2 = inlined_call_operand.vmem [shape: f32[32,16], index: 2, kind: input, shape index: {}]   ;;  %s1937_s3 = inlined_call_operand.vmem [shape: f32[32,16], index: 3, kind: input, shape index: {}]   ;;  %s1938_s4 = inlined_call_operand.vmem [shape: f32[256,32], index: 4, kind: input, shape index: {}]   ;;  %s1939_s5 = inlined_call_operand.vmem [shape: f32[16,256], index: 5, kind: input, shape index: {}]   ;;  %s1940_s6 = inlined_call_operand.vmem [shape: f32[16,256], index: 6, kind: input, shape index: {}]   ;;  %s1941_s7 = inlined_call_operand.vmem [shape: f32[32,5], index: 7, kind: input, shape index: {}]   ;;  %s1942_s8 = inlined_call_operand.hbm [shape: f32[64,256], index: 8, kind: output, shape index: {}]  }
   0x1   :  { %15 = vsyncpa [#allocation3 + $0x1], 0  ;;  %s1520_s27 = smov 0   ;;  %s1522_s28 = smov 0  }
   0x2   :  { %s1524_s29 = smov 0   ;;  %s1526_s30 = smov 0  }
   0x3 LB: > { %s1541_s9 = sadd.s32 4294967295, %s1465_s30   ;;  %s1212_s10 = sadd.s32 4294967294, %s1465_s30   ;;  %s1465_s30 = sphi %s1526_s30, %s1948_s30   ;;  %s1461_s29 = sphi %s1524_s29, %s1947_s29   ;;  %s1457_s28 = sphi %s1522_s28, %s1946_s28   ;;  %s1453_s27 = sphi %s1520_s27, %s1945_s27  }
   0x4   : > { %s1545_s11 = sadd.s32 1, %s1465_s30   ;;  %s201_s12 = sadd.s32 1, %s1461_s29 }
   0x5   : > { %s198_s13 = ssub.s32 %s1465_s30, %s1545_s11  ;;  %p211_p0 = scmp.ne.s32.totalorder %s1461_s29, %s1457_s28 }
   0x6   : > { %p199_p1 = scmp.eq.s32.totalorder %s198_s13, 0  ;;  %p212_p2 = scmp.eq.s32.totalorder %s1541_s9, 1 }
   0x7   : > { %p217_p3 = scmp.ne.s32.totalorder %s1457_s28, %s1453_s27  ;;  %p218_p4 = scmp.eq.s32.totalorder %s1212_s10, 1 }
   0x8   : > { %s1556_s14 = scalar_select %p199_p1, %s1461_s29, %s201_s12  }
   0x9   : > { %p1558_p5 = por %p212_p2, %p211_p0  ;;  %p1562_p6 = por %p218_p4, %p217_p3 }
   0xa   : > { %p1215_p7 = scmp.ge.s32.totalorder %s1465_s30, 1  ;;  %p267_p8 = scmp.lt.s32.totalorder %s1465_s30, 3 }
   0xc   : > { %p268_p9 = pnand %p1215_p7, %p267_p8 }
   0xd   : > { %s1217_s23 = sshll.u32 (!%p268_p9), %s1541_s9, 2  ;;  %s1468_s20 = smov (!%p268_p9), 112  }
   0xe   : > { %271 = sbr.rel (%p268_p9) target bundleno = 855 (0x357), region = 52  ;;  %p303_p10 = scmp.lt.s32.totalorder (!%p268_p9), %s1217_s23, 7 }
   0xf   : > { %s299_s13 = sand.u32 (!%p268_p9), 1, %s1457_s28   ;;  %s1270_s18 = sshll.u32 (!%p268_p9), %s1541_s9, 6 }
  0x10   : > { %s1146_s22 = scalar_lea.hbm (!%p268_p9), %s1942_s8, %s1270_s18  ;;  %s1134_s24 = scalar_lea.sflag (!%p268_p9), [#allocation3], %s299_s13 }
  0x11   : > { %s1149_s9 = sshll.u32 (!%p268_p9), %s1146_s22, 4  ;;  %s1150_s9 = int_to_ptr.hbm [resolvable:$true] %s1149_s9 }
  0x12   : > { %s1417_s25 = sshra.s32 (!%p268_p9), %s1150_s9, 4  ;;  %s1418_s25 = int_to_ptr.hbm [resolvable:$true] %s1417_s25 }
  0x13   : > { %v337_v0 = vld [vmem:[%s1938_s4 + $0x78] sm:$0xff]  ;;  %v336_v2 = vld [vmem:[%s1938_s4 + $0x70] sm:$0xff]  ;;  %v335_v4 = vld [vmem:[%s1938_s4 + $0x68] sm:$0xff]  ;;  %s1950_s23 = smov (!%p303_p10, %s1217_s23), 7  ;;  %v1467_v42 = vmov 4   ;;  %vm424_vm0 = vcmask 261120   ;;  %p1424_p0 = scmp.lt.s32.totalorder %s1418_s25, %s1942_s8 }
  0x14   : > { %v353_v1 = vld [vmem:[%s1938_s4 + $0xf8] sm:$0xff]  ;;  %354 = vmatpush.msra.mxu0 %v337_v0  ;;  %v352_v3 = vld [vmem:[%s1938_s4 + $0xf0] sm:$0xff]  ;;  %v351_v5 = vld [vmem:[%s1938_s4 + $0xe8] sm:$0xff]  ;;  %s1268_s19 = sshll.u32 %s1950_s23, 4  ;;  %1322 = vset.pattern.permute.xlu0 %v1467_v42  ;;  %vm486_vm1 = vcmask 130048   ;;  %s1847_s23 = sshll.u32 %s299_s13, 6 }
  0x15   : > { %383 = vmatpush.msra.mxu1 %v353_v1  ;;  %v334_v6 = vld [vmem:[%s1938_s4 + $0x60] sm:$0xff]  ;;  %v333_v8 = vld [vmem:[%s1938_s4 + $0x58] sm:$0xff]  ;;  %v332_v10 = vld [vmem:[%s1938_s4 + $0x50] sm:$0xff]  ;;  %s307_s17 = scalar_lea.vmem %s1934_s0, %s1268_s19  ;;  %s1419_s26 = scalar_lea.hbm %s1418_s25, 64 }
  0x16   : > { %355 = vmatpush.msra.mxu0 %v336_v2  ;;  %v350_v7 = vld [vmem:[%s1938_s4 + $0xe0] sm:$0xff]  ;;  %v349_v9 = vld [vmem:[%s1938_s4 + $0xd8] sm:$0xff]  ;;  %v348_v11 = vld [vmem:[%s1938_s4 + $0xd0] sm:$0xff]  ;;  %p1420_p11 = scmp.ne.s32.totalorder %s1418_s25, %s1419_s26 }
  0x17   : > { %384 = vmatpush.msra.mxu1 %v352_v3  ;;  %v331_v12 = vld [vmem:[%s1938_s4 + $0x48] sm:$0xff]  ;;  %v330_v14 = vld [vmem:[%s1938_s4 + $0x40] sm:$0xff]  ;;  %v329_v16 = vld [vmem:[%s1938_s4 + $0x38] sm:$0xff] }
  0x18   : > { %356 = vmatpush.msra.mxu0 %v335_v4  ;;  %v347_v13 = vld [vmem:[%s1938_s4 + $0xc8] sm:$0xff]  ;;  %v346_v15 = vld [vmem:[%s1938_s4 + $0xc0] sm:$0xff]  ;;  %v345_v17 = vld [vmem:[%s1938_s4 + $0xb8] sm:$0xff]  ;;  %p1421_p12 = pnand %p1420_p11, %p1558_p5 }
  0x19   : > { %385 = vmatpush.msra.mxu1 %v351_v5  ;;  %v328_v18 = vld [vmem:[%s1938_s4 + $0x30] sm:$0xff]  ;;  %v327_v20 = vld [vmem:[%s1938_s4 + $0x28] sm:$0xff]  ;;  %v326_v22 = vld [vmem:[%s1938_s4 + $0x20] sm:$0xff] }
  0x1a   : > { %357 = vmatpush.msra.mxu0 %v334_v6  ;;  %v344_v19 = vld [vmem:[%s1938_s4 + $0xb0] sm:$0xff]  ;;  %v343_v21 = vld [vmem:[%s1938_s4 + $0xa8] sm:$0xff]  ;;  %v342_v23 = vld [vmem:[%s1938_s4 + $0xa0] sm:$0xff]  ;;  %p1422_p13 = pneg %p1421_p12 }
  0x1b   : > { %386 = vmatpush.msra.mxu1 %v350_v7  ;;  %v325_v24 = vld [vmem:[%s1938_s4 + $0x18] sm:$0xff]  ;;  %v324_v26 = vld [vmem:[%s1938_s4 + $0x10] sm:$0xff]  ;;  %v323_v28 = vld [vmem:[%s1938_s4 + $0x8] sm:$0xff] }
  0x1c   : > { %358 = vmatpush.msra.mxu0 %v333_v8  ;;  %v341_v25 = vld [vmem:[%s1938_s4 + $0x98] sm:$0xff]  ;;  %v340_v27 = vld [vmem:[%s1938_s4 + $0x90] sm:$0xff]  ;;  %v339_v29 = vld [vmem:[%s1938_s4 + $0x88] sm:$0xff] }
  0x1d   : > { %387 = vmatpush.msra.mxu1 %v349_v9  ;;  %v322_v30 = vld [vmem:[%s1938_s4] sm:$0xff]  ;;  %v1670_v33 = vld [vmem:[%s307_s17 + $0x8] sm:$0xff]  ;;  %v1674_v34 = vld [vmem:[%s307_s17 + $0x10] sm:$0xff] }
  0x1e   : > { %359 = vmatpush.msra.mxu0 %v332_v10  ;;  %v338_v31 = vld [vmem:[%s1938_s4 + $0x80] sm:$0xff]  ;;  %v1676_v35 = vld [vmem:[%s307_s17 + $0x18] sm:$0xff]  ;;  %v1682_v37 = vld [vmem:[%s307_s17 + $0x28] sm:$0xff] }
  0x1f   : > { %388 = vmatpush.msra.mxu1 %v348_v11  ;;  %v1668_v32 = vld [vmem:[%s307_s17] sm:$0xff]  ;;  %v1686_v38 = vld [vmem:[%s307_s17 + $0x30] sm:$0xff]  ;;  %v1688_v39 = vld [vmem:[%s307_s17 + $0x38] sm:$0xff] }
  0x20   : > { %360 = vmatpush.msra.mxu0 %v331_v12  ;;  %v1680_v36 = vld [vmem:[%s307_s17 + $0x20] sm:$0xff]  ;;  %v1695_v45 = vld [vmem:[%s1941_s7 + $0x8] sm:$0xff]  ;;  %v466_v12 = vld [vmem:[%s1936_s2 + $0x10] sm:$0xff]  ;;  %s1858_s17 = scalar_lea.vmem [#allocation2], %s1847_s23  ;;  %s1423_s23 = scalar_lea.hbm %s1942_s8, 128 }
  0x21   : > { %389 = vmatpush.msra.mxu1 %v347_v13  ;;  %421 = vperm.xlu0 %1322, %v1695_v45   ;;  %v1701_v48 = vld [vmem:[%s1941_s7] sm:$0xff]  ;;  %v413_v56 = vld [vmem:[%s1935_s1 + $0x8] sm:$0xff]  ;;  %v1469_v13 = vmov 0   ;;  %s1147_s19 = sshll.u32 %s1858_s17, 4  ;;  %p1425_p1 = scmp.lt.s32.totalorder %s1423_s23, %s1419_s26  ;;  %s1148_s19 = int_to_ptr.vmem [resolvable:$true] %s1147_s19 }
  0x22   : > { %361 = vmatpush.msra.mxu0 %v330_v14  ;;  %v412_v55 = vld [vmem:[%s1935_s1] sm:$0xff]  ;;  %v465_v11 = vld [vmem:[%s1936_s2 + $0x8] sm:$0xff]  ;;  %1328 = vset.pattern.permute.xlu1 %v1469_v13  ;;  %v467_v14 = vld [vmem:[%s1936_s2 + $0x18] sm:$0xff] }
  0x23   : > { %390 = vmatpush.msra.mxu1 %v346_v15  ;;  %v464_v10 = vld [vmem:[%s1936_s2] sm:$0xff]  ;;  %1329 = vset.pattern.permute.xlu2 %v1469_v13  ;;  %v1470_v15 = vmov 1   ;;  %p1426_p2 = por %p1425_p1, %p1424_p0 }
  0x24   : > { %362 = vmatpush.msra.mxu0 %v329_v16  ;;  %473 = vperm.xlu2 %1329, %v1695_v45   ;;  %v1733_v16 = vld [vmem:[%s1941_s7 + $0x18] sm:$0xff] }
  0x25   : > { %391 = vmatpush.msra.mxu1 %v345_v17  ;;  %v1739_v17 = vld [vmem:[%s1941_s7 + $0x10] sm:$0xff]  ;;  %p1427_p3 = pnand %p1426_p2, %p1422_p13 }
  0x26   : > { %363 = vmatpush.msra.mxu0 %v328_v18 }
  0x27   : > { %392 = vmatpush.msra.mxu1 %v344_v19  ;;  %v1471_v19 = vmov 2  }
  0x28   : > { %364 = vmatpush.msra.mxu0 %v327_v20 }
  0x29   : > { %393 = vmatpush.msra.mxu1 %v343_v21  ;;  %416 = vperm.xlu0 %1322, %v1701_v48  }
  0x2a   : > { %365 = vmatpush.msra.mxu0 %v326_v22  ;;  %v604_v22 = vld [vmem:[%s1937_s3] sm:$0xff] }
  0x2b   : > { %394 = vmatpush.msra.mxu1 %v342_v23  ;;  %v605_v23 = vld [vmem:[%s1937_s3 + $0x8] sm:$0xff] }
  0x2c   : > { %366 = vmatpush.msra.mxu0 %v325_v24  ;;  %478 = vperm.xlu2 %1329, %v1739_v17   ;;  %v606_v24 = vld [vmem:[%s1937_s3 + $0x10] sm:$0xff] }
  0x2d   : > { %395 = vmatpush.msra.mxu1 %v341_v25  ;;  %v607_v25 = vld [vmem:[%s1937_s3 + $0x18] sm:$0xff] }
  0x2e   : > { %367 = vmatpush.msra.mxu0 %v324_v26 }
  0x2f   : > { %396 = vmatpush.msra.mxu1 %v340_v27 }
  0x30   : > { %368 = vmatpush.msra.mxu0 %v323_v28 }
  0x31   : > { %397 = vmatpush.msra.mxu1 %v339_v29  ;;  %1330 = vset.pattern.permute.xlu0 %v1469_v13 }
  0x32   : > { %369 = vmatpush.msra.mxu0 %v322_v30  ;;  %483 = vperm.xlu0 %1330, %v1733_v16  }
  0x33   : > { %398 = vmatpush.msra.mxu1 %v338_v31  ;;  %370 = vmatmul.f32.vlgmr.msra.gmra.mxu0 %v1668_v32 }
  0x34   : > { %399 = vmatmul.f32.vlgmr.msra.gmra.mxu1 %v1670_v33  ;;  %1332 = vset.pattern.permute.xlu2 %v1470_v15 }
  0x35   : > { %621 = vperm.xlu2 %1332, %v1733_v16  }
  0x3a   : > { %1333 = vset.pattern.permute.xlu0 %v1471_v19 }
  0x3b   : > { %373 = vmatmul.f32.gmra.mxu0 %v1674_v34  ;;  %750 = vperm.xlu0 %1333, %v1701_v48  }
  0x3c   : > { %402 = vmatmul.f32.gmra.mxu1 %v1676_v35 }
  0x3d   : > { %617 = vperm.xlu2 %1332, %v1739_v17  }
  0x43   : > { %376 = vmatmul.f32.gmra.mxu0 %v1680_v36 }
  0x44   : > { %405 = vmatmul.f32.gmra.mxu1 %v1682_v37 }
  0x45   : > { %1335 = vset.pattern.permute.xlu2 %v1471_v19 }
  0x46   : > { %754 = vperm.xlu2 %1335, %v1695_v45  }
  0x4b   : > { %379 = vmatmul.f32.gmra.mxu0 %v1686_v38 }
  0x4c   : > { %408 = vmatmul.f32.gmra.mxu1 %v1688_v39 }
  0x7e   : > { %v474_v30 = vpop.permute.xlu2 %473 }
  0x93   : > { %v422_v57 = vpop.permute.xlu0 %421 }
  0x9b   : > { %v417_v58 = vpop.permute.xlu0 %416 }
  0xb0   : > { %v371_v40 = vpop.f32.mrf.mxu0 }
  0xb1   : > { %v400_v41 = vpop.f32.mrf.mxu1 }
  0xb2   : > { %v401_v54 = vadd.f32 %v400_v41, %v371_v40 }
  0xb8   : > { %v374_v43 = vpop.f32.mrf.mxu0 }
  0xb9   : > { %v403_v44 = vpop.f32.mrf.mxu1 }
  0xba   : > { %v404_v53 = vadd.f32 %v403_v44, %v374_v43  ;;  %v479_v44 = vpop.permute.xlu2 %478 }
  0xc0   : > { %v377_v46 = vpop.f32.mrf.mxu0 }
  0xc1   : > { %v406_v47 = vpop.f32.mrf.mxu1 }
  0xc2   : > { %v407_v52 = vadd.f32 %v406_v47, %v377_v46 }
  0xc8   : > { %v380_v49 = vpop.f32.mrf.mxu0 }
  0xc9   : > { %v409_v50 = vpop.f32.mrf.mxu1 }
  0xca   : > { %v410_v51 = vadd.f32 %v409_v50, %v380_v49 }
  0xcc   : > { %443 = vmatpush.msra.mxu2 %v410_v51 }
  0xce   : > { %444 = vmatpush.msra.mxu2 %v407_v52 }
  0xd0   : > { %445 = vmatpush.msra.mxu2 %v404_v53 }
  0xd2   : > { %446 = vmatpush.msra.mxu2 %v401_v54 }
  0xd3   : > { %1220 = vmatmul.msk.f32.vlgmr.msra.gmra.mxu2 %vm424_vm0, %v412_v55 }
  0xdb   : > { %1221 = vmatmul.msk.f32.gmra.mxu2 %vm424_vm0, %v413_v56 }
 0x156   : > { %v448_v59 = vpop.f32.mrf.mxu2 }
 0x157   : > { %v449_v60 = vadd.f32 %v448_v59, %v417_v58  ;;  %v771_v58 = vld [vmem:[%s1939_s5 + $0x10] sm:$0xff]  ;;  %v772_v59 = vld [vmem:[%s1939_s5 + $0x18] sm:$0xff] }
 0x159   : > { %v454_v61 = vadd.f32 3.0, %v449_v60 }
 0x15b   : > { %v456_v62 = vmax.f32 %v454_v61, 0.0 }
 0x15d   : > { %v458_v1 = vmin.f32 %v456_v62, 6.0 }
 0x15e   : > { %v451_v63 = vpop.f32.mrf.mxu2 }
 0x15f   : > { %v452_v0 = vadd.f32 %v451_v63, %v422_v57  ;;  %v460_v4 = vmul.f32 %v458_v1, %v449_v60  ;;  %v769_v1 = vld [vmem:[%s1939_s5] sm:$0xff] }
 0x161   : > { %v455_v2 = vadd.f32 3.0, %v452_v0  ;;  %v462_v7 = vmul.f32 0.16666667, %v460_v4 }
 0x163   : > { %v457_v3 = vmax.f32 %v455_v2, 0.0  ;;  %v770_v2 = vld [vmem:[%s1939_s5 + $0x8] sm:$0xff] }
 0x165   : > { %v459_v5 = vmin.f32 %v457_v3, 6.0 }
 0x167   : > { %v461_v6 = vmul.f32 %v459_v5, %v452_v0 }
 0x169   : > { %v463_v8 = vmul.f32 0.16666667, %v461_v6 }
 0x16b   : > { %513 = vmatpush.msra.mxu3 %v463_v8  ;;  %v1323_v9 = vpack.i.bf16 %v462_v7, %v463_v8 }
 0x16d   : > { %1324 = vrot.lane.b32.xlu1 %v1323_v9, %s1468_s20  ;;  %514 = vmatpush.msra.mxu3 %v462_v7  ;;  %v484_v7 = vpop.permute.xlu0 %483 }
 0x16e   : > { %1222 = vmatmul.msk.f32.vlgmr.msra.gmra.mxu3 %vm486_vm1, %v464_v10 }
 0x16f   : > { %799 = vmatpush.msrb.mxu3 %v771_v58 }
 0x171   : > { %800 = vmatpush.msrb.mxu3 %v769_v1 }
 0x175   : > { %469 = vperm.xlu1 %1328, %v1701_v48  }
 0x176   : > { %1223 = vmatmul.msk.f32.gmra.mxu3 %vm486_vm1, %v465_v11 }
 0x17d   : > { %1331 = vset.pattern.permute.xlu1 %v1470_v15 }
 0x17e   : > { %1224 = vmatmul.msk.f32.gmra.mxu3 %vm486_vm1, %v466_v12  ;;  %609 = vperm.xlu1 %1331, %v1701_v48  }
 0x186   : > { %1225 = vmatmul.msk.f32.gmra.mxu3 %vm486_vm1, %v467_v14  ;;  %613 = vperm.xlu1 %1331, %v1695_v45  }
 0x18e   : > { %1334 = vset.pattern.permute.xlu1 %v1471_v19 }
 0x18f   : > { %762 = vperm.xlu1 %1334, %v1733_v16  }
 0x197   : > { %758 = vperm.xlu1 %1334, %v1739_v17  }
 0x1df   : > { %v1325_v18 = vpop.permute.xlu1 %1324 }
 0x1e0   : > { %v1326_v20 = vunpack.i.l.bf16 %v1325_v18  ;;  %v1327_v21 = vunpack.i.h.bf16 %v1325_v18 }
 0x1e2   : > { %658 = vmatpush.msrb.mxu2 %v1326_v20 }
 0x1e4   : > { %659 = vmatpush.msrb.mxu2 %v1327_v21 }
 0x1e5   : > { %1230 = vmatmul.msk.f32.vlgmr.msrb.gmra.mxu2 %vm486_vm1, %v604_v22 }
 0x1e6   : > { %828 = vmatpush.msra.mxu2 %v772_v59  ;;  %v622_v59 = vpop.permute.xlu2 %621 }
 0x1e7   : > { %v470_v27 = vpop.permute.xlu1 %469 }
 0x1e8   : > { %829 = vmatpush.msra.mxu2 %v770_v2 }
 0x1ed   : > { %1231 = vmatmul.msk.f32.gmra.mxu2 %vm486_vm1, %v605_v23 }
 0x1f1   : > { %v516_v26 = vpop.f32.mrf.mxu3 }
 0x1f2   : > { %v517_v28 = vadd.f32 %v516_v26, %v470_v27 }
 0x1f4   : > { %v1226_v29 = vmul.f32 -1.442695, %v517_v28 }
 0x1f5   : > { %1232 = vmatmul.msk.f32.gmra.mxu2 %vm486_vm1, %v606_v24 }
 0x1f6   : > { %1339 = vpow2.f32 %v1226_v29 }
 0x1f9   : > { %v519_v31 = vpop.f32.mrf.mxu3 }
 0x1fa   : > { %v520_v40 = vadd.f32 %v519_v31, %v474_v30 }
 0x1fc   : > { %v1340_v41 = vpop.eup %1339  ;;  %v1227_v42 = vmul.f32 -1.442695, %v520_v40 }
 0x1fd   : > { %1233 = vmatmul.msk.f32.gmra.mxu2 %vm486_vm1, %v607_v25  ;;  %v540_v43 = vadd.f32 1.0, %v1340_v41 }
 0x1fe   : > { %1341 = vpow2.f32 %v1227_v42  ;;  %v610_v42 = vpop.permute.xlu1 %609 }
 0x1ff   : > { %1343 = vrcp.f32 %v540_v43  ;;  %v555_v56 = vand.u32 2147483648, %v540_v43  ;;  %vm549_vm2 = vweird.f32 %v540_v43  ;;  %v553_v61 = vand.u32 2147483647, %v540_v43 }
 0x201   : > { %v522_v46 = vpop.f32.mrf.mxu3  ;;  %v556_v0 = vor.u32 1.1754944e-38, %v555_v56  ;;  %vm554_vm5 = vcmp.eq.f32.partialorder %v553_v61, 8.507059e+37 }
 0x202   : > { %v523_v47 = vadd.f32 %v522_v46, %v479_v44  ;;  %v846_v44 = vld [vmem:[%s1940_s6 + $0x18] sm:$0xff] }
 0x203   : > { %902 = vmatpush.msrb.mxu1 %v846_v44 }
 0x204   : > { %v1342_v49 = vpop.eup %1341  ;;  %v1228_v50 = vmul.f32 -1.442695, %v523_v47  ;;  %v843_v47 = vld [vmem:[%s1940_s6] sm:$0xff] }
 0x205   : > { %v1344_v51 = vpop.eup %1343  ;;  %v541_v52 = vadd.f32 1.0, %v1342_v49  ;;  %v844_v49 = vld [vmem:[%s1940_s6 + $0x8] sm:$0xff] }
 0x206   : > { %1345 = vpow2.f32 %v1228_v50  ;;  %v545_v53 = vmul.f32 %v1344_v51, %v540_v43  ;;  %vm550_vm3 = vweird.f32 %v1344_v51  ;;  %v845_v43 = vld [vmem:[%s1940_s6 + $0x10] sm:$0xff]  ;;  %903 = vmatpush.msrb.mxu1 %v844_v49  ;;  %v614_v61 = vpop.permute.xlu1 %613 }
 0x207   : > { %1347 = vrcp.f32 %v541_v52  ;;  %vm551_vm4 = vmor %vm549_vm2, %vm550_vm3  ;;  %v570_v11 = vand.u32 2147483648, %v541_v52  ;;  %vm564_vm6 = vweird.f32 %v541_v52  ;;  %v568_v15 = vand.u32 2147483647, %v541_v52  ;;  %873 = vmatpush.msrb.mxu0 %v845_v43  ;;  %1271 = vmatpush.msra.mxu3 %v845_v43 }
 0x208   : > { %v546_v54 = vsub.f32 1.0, %v545_v53 }
 0x209   : > { %v525_v8 = vpop.f32.mrf.mxu3  ;;  %v571_v18 = vor.u32 1.1754944e-38, %v570_v11  ;;  %vm569_vm9 = vcmp.eq.f32.partialorder %v568_v15, 8.507059e+37  ;;  %874 = vmatpush.msrb.mxu0 %v843_v47  ;;  %1272 = vmatpush.msra.mxu3 %v843_v47 }
 0x20a   : > { %v547_v55 = vmul.f32 %v1344_v51, %v546_v54  ;;  %v526_v9 = vadd.f32 %v525_v8, %v484_v7 }
 0x20c   : > { %v1346_v57 = vpop.eup %1345  ;;  %v548_v60 = vadd.f32 %v1344_v51, %v547_v55  ;;  %v1229_v12 = vmul.f32 -1.442695, %v526_v9 }
 0x20d   : > { %v1348_v62 = vpop.eup %1347  ;;  %v542_v63 = vadd.f32 1.0, %v1346_v57 }
 0x20e   : > { %v552_v3 = vsel %vm551_vm4, %v1344_v51, %v548_v60  ;;  %v560_v4 = vmul.f32 %v1348_v62, %v541_v52  ;;  %vm565_vm7 = vweird.f32 %v1348_v62 }
 0x20f   : > { %1349 = vrcp.f32 %v542_v63  ;;  %v557_v5 = vsel %vm554_vm5, %v556_v0, %v552_v3  ;;  %vm566_vm8 = vmor %vm564_vm6, %vm565_vm7  ;;  %v585_v24 = vand.u32 2147483648, %v542_v63  ;;  %vm579_vm10 = vweird.f32 %v542_v63  ;;  %v618_v3 = vpop.permute.xlu2 %617 }
 0x210   : > { %1238 = vmatmul.msk.f32.vlgmr.msrb.gmra.mxu3 %vm486_vm1, %v557_v5  ;;  %1242 = vmatmul.msk.f32.vlgmr.msra.gmra.mxu2 %vm486_vm1, %v557_v5  ;;  %v561_v6 = vsub.f32 1.0, %v560_v4  ;;  %1351 = vpow2.f32 %v1229_v12  ;;  %v583_v27 = vand.u32 2147483647, %v542_v63 }
 0x211   : > { %v586_v29 = vor.u32 1.1754944e-38, %v585_v24  ;;  %1273 = vmatpush.msrb.mxu3 %v846_v44 }
 0x212   : > { %v562_v10 = vmul.f32 %v1348_v62, %v561_v6  ;;  %vm584_vm13 = vcmp.eq.f32.partialorder %v583_v27, 8.507059e+37 }
 0x213   : > { %1274 = vmatpush.msrb.mxu3 %v844_v49 }
 0x214   : > { %v563_v13 = vadd.f32 %v1348_v62, %v562_v10 }
 0x215   : > { %v1350_v14 = vpop.eup %1349 }
 0x216   : > { %v567_v19 = vsel %vm566_vm8, %v1348_v62, %v563_v13  ;;  %v575_v20 = vmul.f32 %v1350_v14, %v542_v63  ;;  %v1352_v25 = vpop.eup %1351  ;;  %vm580_vm11 = vweird.f32 %v1350_v14 }
 0x217   : > { %v572_v21 = vsel %vm569_vm9, %v571_v18, %v567_v19  ;;  %v543_v28 = vadd.f32 1.0, %v1352_v25  ;;  %vm581_vm12 = vmor %vm579_vm10, %vm580_vm11  ;;  %v751_v25 = vpop.permute.xlu0 %750 }
 0x218   : > { %v576_v22 = vsub.f32 1.0, %v575_v20  ;;  %1239 = vmatmul.msk.f32.gmra.mxu3 %vm486_vm1, %v572_v21  ;;  %1243 = vmatmul.msk.f32.gmra.mxu2 %vm486_vm1, %v572_v21 }
 0x219   : > { %1353 = vrcp.f32 %v543_v28  ;;  %v600_v52 = vand.u32 2147483648, %v543_v28  ;;  %vm594_vm14 = vweird.f32 %v543_v28  ;;  %v598_v55 = vand.u32 2147483647, %v543_v28 }
 0x21a   : > { %v577_v23 = vmul.f32 %v1350_v14, %v576_v22 }
 0x21b   : > { %v601_v56 = vor.u32 1.1754944e-38, %v600_v52  ;;  %vm599_vm2 = vcmp.eq.f32.partialorder %v598_v55, 8.507059e+37 }
 0x21c   : > { %v578_v26 = vadd.f32 %v1350_v14, %v577_v23 }
 0x21e   : > { %v582_v30 = vsel %vm581_vm12, %v1350_v14, %v578_v26  ;;  %v1472_v14 = vmov 3  }
 0x21f   : > { %v587_v31 = vsel %vm584_vm13, %v586_v29, %v582_v30  ;;  %v1354_v40 = vpop.eup %1353  ;;  %1337 = vset.pattern.permute.xlu0 %v1472_v14  ;;  %1338 = vset.pattern.permute.xlu1 %v1472_v14 }
 0x220   : > { %1240 = vmatmul.msk.f32.gmra.mxu3 %vm486_vm1, %v587_v31  ;;  %1244 = vmatmul.msk.f32.gmra.mxu2 %vm486_vm1, %v587_v31  ;;  %v590_v41 = vmul.f32 %v1354_v40, %v543_v28  ;;  %vm595_vm15 = vweird.f32 %v1354_v40 }
 0x221   : > { %vm596_vm0 = vmor %vm594_vm14, %vm595_vm15  ;;  %938 = vperm.xlu0 %1337, %v1695_v45   ;;  %942 = vperm.xlu1 %1338, %v1739_v17  }
 0x222   : > { %v591_v46 = vsub.f32 1.0, %v590_v41  ;;  %1336 = vset.pattern.permute.xlu2 %v1472_v14 }
 0x223   : > { %934 = vperm.xlu2 %1336, %v1701_v48  }
 0x224   : > { %v592_v50 = vmul.f32 %v1354_v40, %v591_v46  ;;  %v755_v46 = vpop.permute.xlu2 %754 }
 0x226   : > { %v593_v54 = vadd.f32 %v1354_v40, %v592_v50 }
 0x228   : > { %v597_v58 = vsel %vm596_vm0, %v1354_v40, %v593_v54  ;;  %v763_v40 = vpop.permute.xlu1 %762 }
 0x229   : > { %v602_v60 = vsel %vm599_vm2, %v601_v56, %v597_v58 }
 0x22a   : > { %1241 = vmatmul.msk.f32.gmra.mxu3 %vm486_vm1, %v602_v60  ;;  %1245 = vmatmul.msk.f32.gmra.mxu2 %vm486_vm1, %v602_v60 }
 0x22b   : > { %946 = vperm.xlu2 %1336, %v1733_v16  }
 0x230   : > { %v759_v58 = vpop.permute.xlu1 %758 }
 0x268   : > { %v661_v51 = vpop.f32.mrf.mxu2 }
 0x269   : > { %v662_v53 = vadd.f32 %v661_v51, %v610_v42 }
 0x26b   : > { %v1234_v57 = vmul.f32 -1.442695, %v662_v53 }
 0x26d   : > { %1355 = vpow2.f32 %v1234_v57 }
 0x270   : > { %v664_v62 = vpop.f32.mrf.mxu2 }
 0x271   : > { %v665_v63 = vadd.f32 %v664_v62, %v614_v61 }
 0x273   : > { %v1356_v0 = vpop.eup %1355  ;;  %v1235_v1 = vmul.f32 -1.442695, %v665_v63 }
 0x274   : > { %v685_v2 = vadd.f32 1.0, %v1356_v0 }
 0x275   : > { %1357 = vpow2.f32 %v1235_v1 }
 0x276   : > { %1359 = vrcp.f32 %v685_v2  ;;  %v700_v13 = vand.u32 2147483648, %v685_v2  ;;  %v698_v19 = vand.u32 2147483647, %v685_v2  ;;  %vm694_vm4 = vweird.f32 %v685_v2 }
 0x278   : > { %v667_v4 = vpop.f32.mrf.mxu2  ;;  %v701_v26 = vor.u32 1.1754944e-38, %v700_v13  ;;  %vm699_vm6 = vcmp.eq.f32.partialorder %v698_v19, 8.507059e+37 }
 0x279   : > { %v668_v5 = vadd.f32 %v667_v4, %v618_v3 }
 0x27b   : > { %v1358_v6 = vpop.eup %1357  ;;  %v1236_v7 = vmul.f32 -1.442695, %v668_v5 }
 0x27c   : > { %v1360_v8 = vpop.eup %1359  ;;  %v686_v9 = vadd.f32 1.0, %v1358_v6 }
 0x27d   : > { %1361 = vpow2.f32 %v1236_v7  ;;  %v690_v10 = vmul.f32 %v1360_v8, %v685_v2  ;;  %vm695_vm3 = vweird.f32 %v1360_v8 }
 0x27e   : > { %1363 = vrcp.f32 %v686_v9  ;;  %vm696_vm5 = vmor %vm694_vm4, %vm695_vm3  ;;  %v715_v30 = vand.u32 2147483648, %v686_v9  ;;  %v713_v48 = vand.u32 2147483647, %v686_v9  ;;  %vm709_vm8 = vweird.f32 %v686_v9 }
 0x27f   : > { %v691_v11 = vsub.f32 1.0, %v690_v10 }
 0x280   : > { %v670_v12 = vpop.f32.mrf.mxu2  ;;  %v716_v47 = vor.u32 1.1754944e-38, %v715_v30  ;;  %vm714_vm10 = vcmp.eq.f32.partialorder %v713_v48, 8.507059e+37 }
 0x281   : > { %v671_v15 = vadd.f32 %v670_v12, %v622_v59  ;;  %v692_v18 = vmul.f32 %v1360_v8, %v691_v11 }
 0x283   : > { %v1362_v20 = vpop.eup %1361  ;;  %v1237_v21 = vmul.f32 -1.442695, %v671_v15  ;;  %v693_v22 = vadd.f32 %v1360_v8, %v692_v18  ;;  %v935_v15 = vpop.permute.xlu2 %934 }
 0x284   : > { %v1364_v23 = vpop.eup %1363  ;;  %v687_v24 = vadd.f32 1.0, %v1362_v20 }
 0x285   : > { %1365 = vpow2.f32 %v1237_v21  ;;  %v697_v27 = vsel %vm696_vm5, %v1360_v8, %v693_v22  ;;  %v705_v28 = vmul.f32 %v1364_v23, %v686_v9  ;;  %vm710_vm7 = vweird.f32 %v1364_v23 }
 0x286   : > { %1367 = vrcp.f32 %v687_v24  ;;  %v702_v45 = vsel %vm699_vm6, %v701_v26, %v697_v27  ;;  %vm711_vm9 = vmor %vm709_vm8, %vm710_vm7  ;;  %v730_v54 = vand.u32 2147483648, %v687_v24  ;;  %v728_v16 = vand.u32 2147483647, %v687_v24 }
 0x287   : > { %v765_v29 = vmul.f32 %v751_v25, %v702_v45  ;;  %v706_v17 = vsub.f32 1.0, %v705_v28  ;;  %vm724_vm12 = vweird.f32 %v687_v24 }
 0x288   : > { %v731_v59 = vor.u32 1.1754944e-38, %v730_v54  ;;  %vm729_vm14 = vcmp.eq.f32.partialorder %v728_v16, 8.507059e+37 }
 0x289   : > { %1246 = vmatmul.msk.f32.vlgmr.msrb.gmra.mxu0 %vm486_vm1, %v765_v29  ;;  %1250 = vmatmul.msk.f32.vlgmr.msrb.gmra.mxu1 %vm486_vm1, %v765_v29  ;;  %v707_v31 = vmul.f32 %v1364_v23, %v706_v17 }
 0x28b   : > { %v1366_v41 = vpop.eup %1365  ;;  %v708_v42 = vadd.f32 %v1364_v23, %v707_v31 }
 0x28c   : > { %v1368_v43 = vpop.eup %1367  ;;  %v688_v44 = vadd.f32 1.0, %v1366_v41 }
 0x28d   : > { %v712_v49 = vsel %vm711_vm9, %v1364_v23, %v708_v42  ;;  %v720_v50 = vmul.f32 %v1368_v43, %v687_v24  ;;  %vm725_vm11 = vweird.f32 %v1368_v43 }
 0x28e   : > { %1369 = vrcp.f32 %v688_v44  ;;  %v717_v51 = vsel %vm714_vm10, %v716_v47, %v712_v49  ;;  %vm726_vm13 = vmor %vm724_vm12, %vm725_vm11  ;;  %v745_v1 = vand.u32 2147483648, %v688_v44  ;;  %v743_v3 = vand.u32 2147483647, %v688_v44 }
 0x28f   : > { %v766_v52 = vmul.f32 %v755_v46, %v717_v51  ;;  %v721_v53 = vsub.f32 1.0, %v720_v50  ;;  %vm739_vm0 = vweird.f32 %v688_v44 }
 0x290   : > { %v746_v5 = vor.u32 1.1754944e-38, %v745_v1  ;;  %vm744_vm3 = vcmp.eq.f32.partialorder %v743_v3, 8.507059e+37 }
 0x291   : > { %1247 = vmatmul.msk.f32.gmra.mxu0 %vm486_vm1, %v766_v52  ;;  %1251 = vmatmul.msk.f32.gmra.mxu1 %vm486_vm1, %v766_v52  ;;  %v722_v55 = vmul.f32 %v1368_v43, %v721_v53 }
 0x293   : > { %v723_v56 = vadd.f32 %v1368_v43, %v722_v55  ;;  %v802_v9 = vpop.f32.mrf.mxu3  ;;  %v831_v10 = vpop.f32.mrf.mxu2 }
 0x294   : > { %v1370_v57 = vpop.eup %1369  ;;  %v939_v30 = vpop.permute.xlu0 %938 }
 0x295   : > { %v735_v60 = vmul.f32 %v1370_v57, %v688_v44  ;;  %v727_v61 = vsel %vm726_vm13, %v1368_v43, %v723_v56  ;;  %vm740_vm15 = vweird.f32 %v1370_v57  ;;  %v943_v16 = vpop.permute.xlu1 %942 }
 0x296   : > { %v732_v62 = vsel %vm729_vm14, %v731_v59, %v727_v61  ;;  %vm741_vm2 = vmor %vm739_vm0, %vm740_vm15 }
 0x297   : > { %v736_v63 = vsub.f32 1.0, %v735_v60  ;;  %v767_v0 = vmul.f32 %v759_v58, %v732_v62 }
 0x299   : > { %v737_v2 = vmul.f32 %v1370_v57, %v736_v63  ;;  %1248 = vmatmul.msk.f32.gmra.mxu0 %vm486_vm1, %v767_v0  ;;  %1252 = vmatmul.msk.f32.gmra.mxu1 %vm486_vm1, %v767_v0 }
 0x29b   : > { %v738_v4 = vadd.f32 %v1370_v57, %v737_v2  ;;  %v805_v20 = vpop.f32.mrf.mxu3  ;;  %v834_v21 = vpop.f32.mrf.mxu2 }
 0x29d   : > { %v742_v6 = vsel %vm741_vm2, %v1370_v57, %v738_v4 }
 0x29e   : > { %v747_v7 = vsel %vm744_vm3, %v746_v5, %v742_v6 }
 0x29f   : > { %v768_v8 = vmul.f32 %v763_v40, %v747_v7 }
 0x2a1   : > { %1249 = vmatmul.msk.f32.vlgmr.msra.gmra.mxu3 %vm486_vm1, %v768_v8 }
 0x2a3   : > { %v808_v41 = vpop.f32.mrf.mxu3 }
 0x2a9   : > { %1253 = vmatmul.msk.f32.vlgmr.msrb.gmra.mxu3 %vm486_vm1, %v768_v8 }
 0x2ad   : > { %v811_v57 = vpop.f32.mrf.mxu3 }
 0x306   : > { %v876_v11 = vpop.f32.mrf.mxu0  ;;  %v905_v12 = vpop.f32.mrf.mxu1 }
 0x307   : > { %v917_v13 = vmul.f32 %v876_v11, %v802_v9  ;;  %v918_v14 = vmul.f32 %v905_v12, %v831_v10 }
 0x309   : > { %v925_v18 = vmul.f32 %v917_v13, %v1668_v32  ;;  %v926_v19 = vmul.f32 %v918_v14, %v1670_v33 }
 0x30b   : > { %v949_v22 = vadd.f32 %v935_v15, %v925_v18  ;;  %v950_v23 = vadd.f32 %v935_v15, %v926_v19 }
 0x30d   : > { %v1811_v24 = vadd.f32 %v949_v22, %v1668_v32  ;;  %v1814_v25 = vadd.f32 %v950_v23, %v1670_v33  ;;  %v837_v33 = vpop.f32.mrf.mxu2 }
 0x30e   : > { %v879_v26 = vpop.f32.mrf.mxu0  ;;  %v908_v27 = vpop.f32.mrf.mxu1 }
 0x30f   : > { %v1254_v28 = vmul.f32 -1.442695, %v1811_v24  ;;  %v1255_v45 = vmul.f32 -1.442695, %v1814_v25  ;;  %v919_v29 = vmul.f32 %v879_v26, %v805_v20  ;;  %v920_v17 = vmul.f32 %v908_v27, %v834_v21  ;;  %v947_v26 = vpop.permute.xlu2 %946 }
 0x311   : > { %1371 = vpow2.f32 %v1254_v28  ;;  %v927_v31 = vmul.f32 %v919_v29, %v1674_v34  ;;  %v928_v48 = vmul.f32 %v920_v17, %v1676_v35 }
 0x312   : > { %1373 = vpow2.f32 %v1255_v45 }
 0x313   : > { %v951_v32 = vadd.f32 %v939_v30, %v927_v31  ;;  %v952_v40 = vadd.f32 %v939_v30, %v928_v48 }
 0x315   : > { %v1821_v42 = vadd.f32 %v951_v32, %v1674_v34  ;;  %v1824_v43 = vadd.f32 %v952_v40, %v1676_v35 }
 0x316   : > { %v882_v44 = vpop.f32.mrf.mxu0  ;;  %v911_v46 = vpop.f32.mrf.mxu1 }
 0x317   : > { %v1372_v47 = vpop.eup %1371  ;;  %v1256_v49 = vmul.f32 -1.442695, %v1821_v42  ;;  %v921_v50 = vmul.f32 %v882_v44, %v808_v41  ;;  %v922_v51 = vmul.f32 %v911_v46, %v837_v33  ;;  %v1257_v54 = vmul.f32 -1.442695, %v1824_v43 }
 0x318   : > { %v1374_v52 = vpop.eup %1373  ;;  %v989_v53 = vadd.f32 1.0, %v1372_v47 }
 0x319   : > { %v990_v55 = vadd.f32 1.0, %v1374_v52  ;;  %1375 = vpow2.f32 %v1256_v49  ;;  %v929_v34 = vmul.f32 %v921_v50, %v1680_v36  ;;  %v930_v56 = vmul.f32 %v922_v51, %v1682_v37  ;;  %v840_v51 = vpop.f32.mrf.mxu2 }
 0x31a   : > { %1377 = vrcp.f32 %v989_v53  ;;  %v1008_v7 = vand.u32 2147483648, %v989_v53  ;;  %vm1002_vm5 = vweird.f32 %v989_v53 }
 0x31b   : > { %1379 = vrcp.f32 %v990_v55  ;;  %v953_v35 = vadd.f32 %v943_v16, %v929_v34  ;;  %v954_v58 = vadd.f32 %v943_v16, %v930_v56  ;;  %v1023_v11 = vand.u32 2147483648, %v990_v55 }
 0x31c   : > { %1381 = vpow2.f32 %v1257_v54  ;;  %v1021_v13 = vand.u32 2147483647, %v990_v55  ;;  %v1009_v19 = vor.u32 1.1754944e-38, %v1008_v7  ;;  %vm1017_vm8 = vweird.f32 %v990_v55 }
 0x31d   : > { %v1831_v59 = vadd.f32 %v953_v35, %v1680_v36  ;;  %v1834_v61 = vadd.f32 %v954_v58, %v1682_v37  ;;  %v1006_v37 = vand.u32 2147483647, %v989_v53  ;;  %v1024_v22 = vor.u32 1.1754944e-38, %v1023_v11 }
 0x31e   : > { %vm1022_vm10 = vcmp.eq.f32.partialorder %v1021_v13, 8.507059e+37 }
 0x31f   : > { %v1376_v60 = vpop.eup %1375  ;;  %v1258_v0 = vmul.f32 -1.442695, %v1831_v59  ;;  %v1259_v36 = vmul.f32 -1.442695, %v1834_v61  ;;  %vm1007_vm7 = vcmp.eq.f32.partialorder %v1006_v37, 8.507059e+37 }
 0x320   : > { %v1378_v62 = vpop.eup %1377  ;;  %v1836_v63 = vadd.f32 1.0, %v1376_v60 }
 0x321   : > { %v1380_v1 = vpop.eup %1379  ;;  %v998_v2 = vmul.f32 %v1378_v62, %v989_v53  ;;  %vm1003_vm1 = vweird.f32 %v1378_v62 }
 0x322   : > { %v1382_v3 = vpop.eup %1381  ;;  %v1013_v4 = vmul.f32 %v1380_v1, %v990_v55  ;;  %1383 = vrcp.f32 %v1836_v63  ;;  %vm1018_vm4 = vweird.f32 %v1380_v1  ;;  %vm1004_vm6 = vmor %vm1002_vm5, %vm1003_vm1  ;;  %v1038_v17 = vand.u32 2147483648, %v1836_v63 }
 0x323   : > { %v999_v5 = vsub.f32 1.0, %v998_v2  ;;  %v1840_v6 = vadd.f32 1.0, %v1382_v3  ;;  %1385 = vpow2.f32 %v1258_v0  ;;  %vm1019_vm9 = vmor %vm1017_vm8, %vm1018_vm4  ;;  %v1036_v50 = vand.u32 2147483647, %v1836_v63 }
 0x324   : > { %v1014_v8 = vsub.f32 1.0, %v1013_v4  ;;  %v885_v9 = vpop.f32.mrf.mxu3  ;;  %vm1032_vm12 = vweird.f32 %v1836_v63  ;;  %v1039_v54 = vor.u32 1.1754944e-38, %v1038_v17 }
 0x325   : > { %v1000_v10 = vmul.f32 %v1378_v62, %v999_v5  ;;  %1387 = vrcp.f32 %v1840_v6  ;;  %v923_v15 = vmul.f32 %v885_v9, %v811_v57  ;;  %v1053_v55 = vand.u32 2147483648, %v1840_v6 }
 0x326   : > { %v1015_v12 = vmul.f32 %v1380_v1, %v1014_v8  ;;  %1389 = vpow2.f32 %v1259_v36  ;;  %v1051_v56 = vand.u32 2147483647, %v1840_v6  ;;  %vm1037_vm15 = vcmp.eq.f32.partialorder %v1036_v50, 8.507059e+37 }
 0x327   : > { %v1001_v14 = vadd.f32 %v1378_v62, %v1000_v10  ;;  %v931_v27 = vmul.f32 %v923_v15, %v1686_v38  ;;  %vm1047_vm0 = vweird.f32 %v1840_v6 }
 0x328   : > { %v1384_v18 = vpop.eup %1383  ;;  %v1016_v20 = vadd.f32 %v1380_v1, %v1015_v12  ;;  %vm1052_vm3 = vcmp.eq.f32.partialorder %v1051_v56, 8.507059e+37 }
 0x329   : > { %v1005_v21 = vsel %vm1004_vm6, %v1378_v62, %v1001_v14  ;;  %v1028_v23 = vmul.f32 %v1384_v18, %v1836_v63  ;;  %v1386_v28 = vpop.eup %1385  ;;  %v955_v44 = vadd.f32 %v947_v26, %v931_v27  ;;  %vm1033_vm11 = vweird.f32 %v1384_v18 }
 0x32a   : > { %v1010_v45 = vsel %vm1007_vm7, %v1009_v19, %v1005_v21  ;;  %v1020_v29 = vsel %vm1019_vm9, %v1380_v1, %v1016_v20  ;;  %v1853_v40 = vadd.f32 1.0, %v1386_v28  ;;  %vm1034_vm13 = vmor %vm1032_vm12, %vm1033_vm11  ;;  %v1054_v63 = vor.u32 1.1754944e-38, %v1053_v55 }
 0x32b   : > { %v1388_v30 = vpop.eup %1387  ;;  %v1025_v31 = vsel %vm1022_vm10, %v1024_v22, %v1020_v29  ;;  %v1117_v48 = vmul.f32 %v1010_v45, %v1811_v24  ;;  %v1029_v32 = vsub.f32 1.0, %v1028_v23  ;;  %v1868_v52 = vadd.f32 %v955_v44, %v1686_v38 }
 0x32c   : > { %v1118_v41 = vmul.f32 %v1025_v31, %v1814_v25  ;;  %v1043_v33 = vmul.f32 %v1388_v30, %v1840_v6  ;;  %v914_v46 = vpop.f32.mrf.mxu3  ;;  %v1390_v47 = vpop.eup %1389  ;;  %1391 = vrcp.f32 %v1853_v40  ;;  %vm1048_vm14 = vweird.f32 %v1388_v30 }
 0x32d   : > { %1125 = vst [vmem:[%s1858_s17] sm:$0xff] %v1117_v48  ;;  %v1030_v49 = vmul.f32 %v1384_v18, %v1029_v32  ;;  %v1865_v25 = vadd.f32 1.0, %v1390_v47  ;;  %v924_v16 = vmul.f32 %v914_v46, %v840_v51  ;;  %v1260_v57 = vmul.f32 -1.442695, %v1868_v52  ;;  %vm1049_vm2 = vmor %vm1047_vm0, %vm1048_vm14 }
 0x32e   : > { %1126 = vst [vmem:[%s1858_s17 + $0x8] sm:$0xff] %v1118_v41  ;;  %v1044_v24 = vsub.f32 1.0, %v1043_v33  ;;  %v1068_v7 = vand.u32 2147483648, %v1853_v40  ;;  %v1066_v9 = vand.u32 2147483647, %v1853_v40  ;;  %vm1062_vm4 = vweird.f32 %v1853_v40 }
 0x32f   : > { %v1031_v53 = vadd.f32 %v1384_v18, %v1030_v49  ;;  %1393 = vrcp.f32 %v1865_v25  ;;  %v932_v60 = vmul.f32 %v924_v16, %v1688_v39  ;;  %v1083_v13 = vand.u32 2147483648, %v1865_v25 }
 0x330   : > { %v1045_v34 = vmul.f32 %v1388_v30, %v1044_v24  ;;  %1395 = vpow2.f32 %v1260_v57  ;;  %v1069_v14 = vor.u32 1.1754944e-38, %v1068_v7  ;;  %vm1067_vm7 = vcmp.eq.f32.partialorder %v1066_v9, 8.507059e+37 }
 0x331   : > { %v1035_v35 = vsel %vm1034_vm13, %v1384_v18, %v1031_v53  ;;  %v956_v3 = vadd.f32 %v947_v26, %v932_v60  ;;  %v1081_v18 = vand.u32 2147483647, %v1865_v25  ;;  %vm1077_vm8 = vweird.f32 %v1865_v25 }
 0x332   : > { %v1040_v58 = vsel %vm1037_vm15, %v1039_v54, %v1035_v35  ;;  %v1046_v38 = vadd.f32 %v1388_v30, %v1045_v34  ;;  %v1392_v62 = vpop.eup %1391  ;;  %v1084_v22 = vor.u32 1.1754944e-38, %v1083_v13 }
 0x333   : > { %v1119_v0 = vmul.f32 %v1040_v58, %v1821_v42  ;;  %v1058_v2 = vmul.f32 %v1392_v62, %v1853_v40  ;;  %v1881_v37 = vadd.f32 %v956_v3, %v1688_v39  ;;  %vm1063_vm1 = vweird.f32 %v1392_v62 }
 0x334   : > { %v1050_v1 = vsel %vm1049_vm2, %v1388_v30, %v1046_v38  ;;  %vm1064_vm5 = vmor %vm1062_vm4, %vm1063_vm1  ;;  %vm1082_vm10 = vcmp.eq.f32.partialorder %v1081_v18, 8.507059e+37 }
 0x335   : > { %v1055_v4 = vsel %vm1052_vm3, %v1054_v63, %v1050_v1  ;;  %1127 = vst [vmem:[%s1858_s17 + $0x10] sm:$0xff] %v1119_v0  ;;  %v1394_v5 = vpop.eup %1393  ;;  %v1059_v6 = vsub.f32 1.0, %v1058_v2  ;;  %v1261_v10 = vmul.f32 -1.442695, %v1881_v37 }
 0x336   : > { %v1120_v36 = vmul.f32 %v1055_v4, %v1824_v43  ;;  %v1073_v8 = vmul.f32 %v1394_v5, %v1865_v25  ;;  %v1396_v11 = vpop.eup %1395  ;;  %vm1078_vm6 = vweird.f32 %v1394_v5 }
 0x337   : > { %v1060_v42 = vmul.f32 %v1392_v62, %v1059_v6  ;;  %v995_v39 = vadd.f32 1.0, %v1396_v11  ;;  %1397 = vpow2.f32 %v1261_v10  ;;  %vm1079_vm9 = vmor %vm1077_vm8, %vm1078_vm6 }
 0x338   : > { %1128 = vst [vmem:[%s1858_s17 + $0x18] sm:$0xff] %v1120_v36  ;;  %v1074_v12 = vsub.f32 1.0, %v1073_v8 }
 0x339   : > { %v1061_v43 = vadd.f32 %v1392_v62, %v1060_v42  ;;  %1399 = vrcp.f32 %v995_v39  ;;  %v1098_v48 = vand.u32 2147483648, %v995_v39  ;;  %v1096_v40 = vand.u32 2147483647, %v995_v39 }
 0x33a   : > { %v1075_v15 = vmul.f32 %v1394_v5, %v1074_v12  ;;  %vm1092_vm12 = vweird.f32 %v995_v39 }
 0x33b   : > { %v1065_v19 = vsel %vm1064_vm5, %v1392_v62, %v1061_v43  ;;  %v1099_v33 = vor.u32 1.1754944e-38, %v1098_v48  ;;  %vm1097_vm14 = vcmp.eq.f32.partialorder %v1096_v40, 8.507059e+37 }
 0x33c   : > { %v1070_v20 = vsel %vm1067_vm7, %v1069_v14, %v1065_v19  ;;  %v1076_v21 = vadd.f32 %v1394_v5, %v1075_v15 }
 0x33d   : > { %v1121_v23 = vmul.f32 %v1070_v20, %v1831_v59  ;;  %v1398_v27 = vpop.eup %1397 }
 0x33e   : > { %v1080_v26 = vsel %vm1079_vm9, %v1394_v5, %v1076_v21  ;;  %v996_v29 = vadd.f32 1.0, %v1398_v27 }
 0x33f   : > { %v1085_v28 = vsel %vm1082_vm10, %v1084_v22, %v1080_v26  ;;  %1129 = vst [vmem:[%s1858_s17 + $0x20] sm:$0xff] %v1121_v23  ;;  %v1400_v17 = vpop.eup %1399 }
 0x340   : > { %v1122_v45 = vmul.f32 %v1085_v28, %v1834_v61  ;;  %v1088_v30 = vmul.f32 %v1400_v17, %v995_v39  ;;  %1401 = vrcp.f32 %v996_v29  ;;  %vm1093_vm11 = vweird.f32 %v1400_v17 }
 0x341   : > { %vm1094_vm13 = vmor %vm1092_vm12, %vm1093_vm11  ;;  %v1113_v50 = vand.u32 2147483648, %v996_v29  ;;  %v1111_v25 = vand.u32 2147483647, %v996_v29  ;;  %vm1107_vm0 = vweird.f32 %v996_v29 }
 0x342   : > { %1130 = vst [vmem:[%s1858_s17 + $0x28] sm:$0xff] %v1122_v45  ;;  %v1089_v31 = vsub.f32 1.0, %v1088_v30 }
 0x343   : > { %v1114_v53 = vor.u32 1.1754944e-38, %v1113_v50  ;;  %vm1112_vm3 = vcmp.eq.f32.partialorder %v1111_v25, 8.507059e+37 }
 0x344   : > { %v1090_v32 = vmul.f32 %v1400_v17, %v1089_v31 }
 0x346   : > { %v1402_v41 = vpop.eup %1401  ;;  %v1091_v59 = vadd.f32 %v1400_v17, %v1090_v32 }
 0x347   : > { %v1103_v44 = vmul.f32 %v1402_v41, %v996_v29  ;;  %vm1108_vm15 = vweird.f32 %v1402_v41 }
 0x348   : > { %v1095_v61 = vsel %vm1094_vm13, %v1400_v17, %v1091_v59  ;;  %vm1109_vm2 = vmor %vm1107_vm0, %vm1108_vm15 }
 0x349   : > { %v1100_v46 = vsel %vm1097_vm14, %v1099_v33, %v1095_v61  ;;  %v1104_v47 = vsub.f32 1.0, %v1103_v44 }
 0x34a   : > { %v1123_v49 = vmul.f32 %v1100_v46, %v1868_v52 }
 0x34b   : > { %v1105_v24 = vmul.f32 %v1402_v41, %v1104_v47 }
 0x34c   : > { %1131 = vst [vmem:[%s1858_s17 + $0x30] sm:$0xff] %v1123_v49 }
 0x34d   : > { %v1106_v51 = vadd.f32 %v1402_v41, %v1105_v24 }
 0x34f   : > { %v1110_v54 = vsel %vm1109_vm2, %v1402_v41, %v1106_v51 }
 0x350   : > { %v1115_v52 = vsel %vm1112_vm3, %v1114_v53, %v1110_v54 }
 0x351   : > { %v1124_v55 = vmul.f32 %v1115_v52, %v1881_v37 }
 0x353   : > { %1132 = vst [vmem:[%s1858_s17 + $0x38] sm:$0xff] %v1124_v55 }
 0x354   : > { %1430 = shalt.err (!%p1427_p3)
}
 0x355   : > { %s1473_s13 = smov 256   ;;  %s1474_s17 = smov 16  }
 0x356   : > { %1275 = dma.vmem_to_hbm [thread:$0]  (%p1558_p5), %s1148_s19, 1024, %s1150_s9, %s1134_s24, %s1473_s13, %s1473_s13, %s1474_s17  }
 0x357 PF: > { %p1281_p4 = scmp.ge.s32.totalorder %s1465_s30, 2  ;;  %s1164_s21 = sand.u32 1, %s1453_s27  }
 0x358   : > { %s1165_s22 = scalar_lea.sflag [#allocation3], %s1164_s21 }
 0x359   : > { %p1278_p7 = pnand %p1281_p4, %p1562_p6 }
 0x35b   : > { %p1279_p8 = pneg %p1278_p7 }
 0x35d   : > { %1448 = dma.done.wait (%p1279_p8), %s1165_s22, 1024  }
 0x35e   : > { %1450 = vsyncadd (%p1279_p8), %s1165_s22, 4294966272  ;;  %p18_p9 = scmp.ge.s32.totalorder %s1545_s11, 4   ;;  %s1945_s27 = smov %s1457_s28 }
 0x35f   : > { %s1946_s28 = smov %s1461_s29  ;;  %s1947_s29 = smov %s1556_s14 }
 0x360   : > { %s1948_s30 = smov %s1545_s11  ;;  %20 = sbr.rel (!%p18_p9) target bundleno = 3 (0x3), region = 87 }
 0x365   :  { %1171 = vsyncpa [#allocation3], 1 }
 0x366   :  { %1173 = vsyncpa [#allocation3 + $0x1], 1 }

</bundles_post_ra>
